<compile_context>
chip_gen: v6e
topology: v6e:2x2x1
jax: 0.10.0
libtpu: 0.0.40
codegen_flags: <defaults>
</compile_context>

<pallas_src>
import functools

import jax
import jax.numpy as jnp
import numpy as np
from jax.experimental import pallas as pl


# Toy hyper-parameters, structurally identical to PhysicalAttention's defaults
# (attn_L=196, attn_D=512, ATTN_D_DOWN=16, bottleneck_dim=3, embedding_dim=10,
#  mlp hidden 512), just scaled down.
L = 16            # attn_L         (spatial grid 4x4)
D = 32            # attn_D         (vgg channels)
D_DOWN = 8        # ATTN_D_DOWN
BOTTLENECK = 4    # bottleneck_dim
EMBED = 8         # embedding_dim
HIDDEN = 32       # mlp_pre_attn hidden width (512 in the original)
NPEDS = 4


def _phys_attn_kernel(pos_t_ref, vgg_t_ref, w_ref, b_ref, out_ref, *,
                      npeds, w_off, b_off):
    """Whole PhysicalAttention forward in one invocation; everything stays on-chip."""
    f32 = jnp.float32
    o_wse, o_wp, o_w1f, o_w1e, o_w2, o_wa, o_ba = w_off
    o_bse, o_bp, o_b1, o_b2 = b_off

    # ---- static views into the packed parameter slabs ------------------------
    w_se = w_ref[o_wse:o_wse + EMBED, 0:2]           # (EMBED, 2)
    w_p = w_ref[o_wp:o_wp + D_DOWN, 0:D]             # (D_DOWN, D)
    w1f = w_ref[o_w1f:o_w1f + HIDDEN, 0:D_DOWN]      # (HIDDEN, D_DOWN)  feature half
    w1e = w_ref[o_w1e:o_w1e + HIDDEN, 0:EMBED]       # (HIDDEN, EMBED)   embedding half
    w2 = w_ref[o_w2:o_w2 + BOTTLENECK, 0:HIDDEN]     # (BOTTLENECK, HIDDEN)
    ba = w_ref[o_ba:o_ba + 1, 0:L]                   # (1, L) attn bias row

    b_se = b_ref[o_bse:o_bse + EMBED, :]             # (EMBED, 1)
    b_p = b_ref[o_bp:o_bp + D_DOWN, :]               # (D_DOWN, 1)
    b_1 = b_ref[o_b1:o_b1 + HIDDEN, :]               # (HIDDEN, 1)
    b_2 = b_ref[o_b2:o_b2 + BOTTLENECK, :]           # (BOTTLENECK, 1)

    # ---- pedestrian-invariant path: computed exactly once ---------------------
    # fp^T = W_proj @ vgg^T + b_proj                        : (D_DOWN, L)
    fp_t = jnp.dot(w_p, vgg_t_ref[...], preferred_element_type=f32) + b_p
    # feature half of mlp layer 1 (+ its bias), shared by every pedestrian
    hf_t = jnp.dot(w1f, fp_t, preferred_element_type=f32) + b_1         # (HIDDEN, L)

    # ---- per-ped embedding path, batched over npeds (peds on the lane axis) ---
    emb_t = jnp.dot(w_se, pos_t_ref[...], preferred_element_type=f32) + b_se  # (EMBED, npeds)
    he_t = jnp.dot(w1e, emb_t, preferred_element_type=f32)                    # (HIDDEN, npeds)

    # ---- mlp_pre_attn layer 2: attn_h held as (BOTTLENECK, L) per pedestrian --
    at = []                                  # at[n][b, l] == attn_h[n, l, b]
    for n in range(npeds):                   # tiny static loop, fully unrolled
        h_t = jnp.maximum(hf_t + he_t[:, n:n + 1], 0.0)                 # (HIDDEN, L)
        a_n = jnp.dot(w2, h_t, preferred_element_type=f32) + b_2        # (BOTTLENECK, L)
        at.append(jnp.maximum(a_n, 0.0))

    # ---- attn Linear(L*B -> L): B fat matmuls with peds folded into M ---------
    # logits[n, o] = ba[o] + sum_{l,b} attn_h[n, l, b] * W_attn[o, l*B + b]
    cols = []                                # cols[b][n, l] == attn_h[n, l, b]
    acc = None
    for b in range(BOTTLENECK):
        col_b = jnp.concatenate([at[n][b:b + 1, :] for n in range(npeds)], axis=0)
        cols.append(col_b)                                              # (npeds, L)
        wa_b = w_ref[o_wa + b * L:o_wa + (b + 1) * L, 0:L]              # (L, L)
        term = jnp.dot(col_b, wa_b, preferred_element_type=f32)
        acc = term if acc is None else acc + term
    logits = acc + ba                                                   # (npeds, L)

    # ---- lane-major softmax over L --------------------------------------------
    m = jnp.max(logits, axis=-1, keepdims=True)
    e = jnp.exp(logits - m)
    s = jnp.sum(e, axis=-1, keepdims=True)
    r = pl.reciprocal(s, approx=True)        # EUP seed ...
    r = r * (2.0 - s * r)                    # ... + one Newton step -> full f32 accuracy
    w_soft = e * r                           # (npeds, L)

    # ---- weighted sum over L; single lane-contiguous store of the whole block --
    out_cols = [jnp.sum(cols[b] * w_soft, axis=-1, keepdims=True)
                for b in range(BOTTLENECK)]                             # each (npeds, 1)
    out_ref[...] = jnp.concatenate(out_cols, axis=1).astype(out_ref.dtype)


# ---------------------------- parameter packing -------------------------------
def _pack_rows(pieces, width):
    """Row-stack 2D pieces into one (R, width) f32 slab; each piece is zero-padded
    to `width` lanes and a multiple-of-8 row count.  Returns (slab, row_offsets)."""
    blocks, offsets, r = [], [], 0
    for p in pieces:
        p = jnp.asarray(p, jnp.float32)
        rows, cols = p.shape
        rpad = (-rows) % 8
        blocks.append(jnp.pad(p, ((0, rpad), (0, width - cols))))
        offsets.append(r)
        r += rows + rpad
    return jnp.concatenate(blocks, axis=0), tuple(offsets)


def pack_params(params):
    """One-time preprocessing: pack all weights/biases into 2 slabs (2 DMAs)."""
    w1 = params["w1"]                                     # (HIDDEN, D_DOWN + EMBED)
    # attn weight (L, L*B): regroup to [b, l, o] and flatten b-major so every
    # b-slice is a ready-to-use (L, L) matmul operand inside the kernel.
    wa = params["w_attn"].reshape(L, L, BOTTLENECK)       # [o, l, b]
    wa_bt = jnp.transpose(wa, (2, 1, 0)).reshape(BOTTLENECK * L, L)

    w_pieces = [params["w_se"],           # (EMBED, 2)
                params["w_proj"],         # (D_DOWN, D)
                w1[:, :D_DOWN],           # (HIDDEN, D_DOWN)  feature half
                w1[:, D_DOWN:],           # (HIDDEN, EMBED)   embedding half
                params["w2"],             # (BOTTLENECK, HIDDEN)
                wa_bt,                    # (BOTTLENECK*L, L)
                params["b_attn"].reshape(1, L)]
    w_width = max(p.shape[1] for p in w_pieces)
    w_slab, w_off = _pack_rows(w_pieces, w_width)

    b_pieces = [params["b_se"].reshape(-1, 1), params["b_proj"].reshape(-1, 1),
                params["b1"].reshape(-1, 1), params["b2"].reshape(-1, 1)]
    b_slab, b_off = _pack_rows(b_pieces, 1)
    return dict(w_slab=w_slab, b_slab=b_slab, w_off=w_off, b_off=b_off)


def physical_attention_forward(vgg, end_pos, packed):
    """Pallas implementation of PhysicalAttention.forward (uses packed params)."""
    npeds = end_pos.shape[1]
    vgg_t = vgg.reshape(-1, D).T.astype(jnp.float32)      # (D, L)    tiny glue transpose
    pos_t = end_pos[0].T.astype(jnp.float32)              # (2, npeds)

    kernel = functools.partial(_phys_attn_kernel, npeds=npeds,
                               w_off=packed["w_off"], b_off=packed["b_off"])
    # No grid: single invocation, whole (tiny) arrays resident in VMEM.
    return pl.pallas_call(
        kernel,
        out_shape=jax.ShapeDtypeStruct((npeds, BOTTLENECK), jnp.float32),
    )(pos_t, vgg_t, packed["w_slab"], packed["b_slab"])


# ---------------- pure-JAX reference (mirrors the PyTorch forward) ------------
def reference_forward(vgg, end_pos, params):
    npeds = end_pos.shape[1]
    pos = end_pos[0]
    emb = pos @ params["w_se"].T + params["b_se"]                        # (n, E)
    emb = jnp.broadcast_to(emb[:, None, :], (npeds, L, EMBED))
    vgg_rep = jnp.broadcast_to(vgg.reshape(1, L, D), (npeds, L, D)).reshape(-1, D)
    fp = (vgg_rep @ params["w_proj"].T + params["b_proj"]).reshape(npeds, L, D_DOWN)
    x = jnp.concatenate([fp, emb], axis=2).reshape(-1, D_DOWN + EMBED)
    h = jnp.maximum(x @ params["w1"].T + params["b1"], 0.0)
    attn_h = jnp.maximum(h @ params["w2"].T + params["b2"], 0.0)
    attn_h = attn_h.reshape(npeds, L, BOTTLENECK)
    logits = attn_h.reshape(npeds, L * BOTTLENECK) @ params["w_attn"].T + params["b_attn"]
    attn_w = jax.nn.softmax(logits, axis=1).reshape(npeds, L, 1)
    return jnp.sum(attn_h * attn_w, axis=1)


def _init_linear(key, out_dim, in_dim):
    kw, kb = jax.random.split(key)
    bound = 1.0 / np.sqrt(in_dim)
    w = jax.random.uniform(kw, (out_dim, in_dim), jnp.float32, -bound, bound)
    b = jax.random.uniform(kb, (out_dim,), jnp.float32, -bound, bound)
    return w, b


if __name__ == "__main__":
    key = jax.random.PRNGKey(0)
    k_se, k_proj, k_1, k_2, k_attn, k_vgg, k_pos = jax.random.split(key, 7)

    w_se, b_se = _init_linear(k_se, EMBED, 2)
    w_proj, b_proj = _init_linear(k_proj, D_DOWN, D)
    w1, b1 = _init_linear(k_1, HIDDEN, D_DOWN + EMBED)
    w2, b2 = _init_linear(k_2, BOTTLENECK, HIDDEN)
    w_attn, b_attn = _init_linear(k_attn, L, L * BOTTLENECK)
    params = dict(w_se=w_se, b_se=b_se, w_proj=w_proj, b_proj=b_proj,
                  w1=w1, b1=b1, w2=w2, b2=b2, w_attn=w_attn, b_attn=b_attn)

    vgg = jax.random.normal(k_vgg, (1, 4, 4, D), jnp.float32)      # NHWC, L = 4*4
    end_pos = jax.random.normal(k_pos, (1, NPEDS, 2), jnp.float32)

    packed = pack_params(params)                                   # one-time preprocessing

    out = physical_attention_forward(vgg, end_pos, packed)
    jax.block_until_ready(out)

    ref = reference_forward(vgg, end_pos, params)
    np.testing.assert_allclose(np.asarray(out), np.asarray(ref),
                               rtol=1e-4, atol=1e-5)
    print("KERNEL_OK")
</pallas_src>

<mosaic_0001>
module attributes {stable_mosaic.version = 11 : i64} {
  func.func @_phys_attn_kernel(%arg0: memref<2x4xf32, #tpu.memory_space<vmem>>, %arg1: memref<32x16xf32, #tpu.memory_space<vmem>>, %arg2: memref<160x32xf32, #tpu.memory_space<vmem>>, %arg3: memref<56x1xf32, #tpu.memory_space<vmem>>, %arg4: memref<4x4xf32, #tpu.memory_space<vmem>>) attributes {dimension_semantics = [], scalar_prefetch = 0 : i64, scratch_operands = 0 : i64, tpu.core_type = #tpu.core_type<tc>} {
    %c0 = arith.constant 0 : index
    %c0_0 = arith.constant 0 : index
    %0 = vector.load %arg2[%c0, %c0_0] : memref<160x32xf32, #tpu.memory_space<vmem>>, vector<8x2xf32>
    %c8 = arith.constant 8 : index
    %c0_1 = arith.constant 0 : index
    %1 = vector.load %arg2[%c8, %c0_1] : memref<160x32xf32, #tpu.memory_space<vmem>>, vector<8x32xf32>
    %c16 = arith.constant 16 : index
    %c0_2 = arith.constant 0 : index
    %2 = vector.load %arg2[%c16, %c0_2] : memref<160x32xf32, #tpu.memory_space<vmem>>, vector<32x8xf32>
    %c48 = arith.constant 48 : index
    %c0_3 = arith.constant 0 : index
    %3 = vector.load %arg2[%c48, %c0_3] : memref<160x32xf32, #tpu.memory_space<vmem>>, vector<32x8xf32>
    %c80 = arith.constant 80 : index
    %c0_4 = arith.constant 0 : index
    %4 = vector.load %arg2[%c80, %c0_4] : memref<160x32xf32, #tpu.memory_space<vmem>>, vector<4x32xf32>
    %c152 = arith.constant 152 : index
    %c0_5 = arith.constant 0 : index
    %5 = vector.load %arg2[%c152, %c0_5] : memref<160x32xf32, #tpu.memory_space<vmem>>, vector<1x16xf32>
    %c0_6 = arith.constant 0 : index
    %c0_7 = arith.constant 0 : index
    %6 = vector.load %arg3[%c0_6, %c0_7] : memref<56x1xf32, #tpu.memory_space<vmem>>, vector<8x1xf32>
    %c8_8 = arith.constant 8 : index
    %c0_9 = arith.constant 0 : index
    %7 = vector.load %arg3[%c8_8, %c0_9] : memref<56x1xf32, #tpu.memory_space<vmem>>, vector<8x1xf32>
    %c16_10 = arith.constant 16 : index
    %c0_11 = arith.constant 0 : index
    %8 = vector.load %arg3[%c16_10, %c0_11] : memref<56x1xf32, #tpu.memory_space<vmem>>, vector<32x1xf32>
    %c48_12 = arith.constant 48 : index
    %c0_13 = arith.constant 0 : index
    %9 = vector.load %arg3[%c48_12, %c0_13] : memref<56x1xf32, #tpu.memory_space<vmem>>, vector<4x1xf32>
    %c0_14 = arith.constant 0 : index
    %c0_15 = arith.constant 0 : index
    %10 = vector.load %arg1[%c0_14, %c0_15] : memref<32x16xf32, #tpu.memory_space<vmem>>, vector<32x16xf32>
    %cst = arith.constant dense<0.000000e+00> : vector<8x16xf32>
    %11 = tpu.matmul %1, %10, %cst {dimension_numbers = #tpu.dot_dimension_numbers<[1], [0], [0], [1], [0, 0, 1, 1], [], []>} : vector<8x32xf32>, vector<32x16xf32>, vector<8x16xf32> -> vector<8x16xf32>
    %12 = vector.broadcast %7 : vector<8x1xf32> to vector<8x16xf32>
    %13 = arith.addf %11, %12 : vector<8x16xf32>
    %cst_16 = arith.constant dense<0.000000e+00> : vector<32x16xf32>
    %14 = tpu.matmul %2, %13, %cst_16 {dimension_numbers = #tpu.dot_dimension_numbers<[1], [0], [0], [1], [0, 0, 1, 1], [], []>} : vector<32x8xf32>, vector<8x16xf32>, vector<32x16xf32> -> vector<32x16xf32>
    %15 = vector.broadcast %8 : vector<32x1xf32> to vector<32x16xf32>
    %16 = arith.addf %14, %15 : vector<32x16xf32>
    %c0_17 = arith.constant 0 : index
    %c0_18 = arith.constant 0 : index
    %17 = vector.load %arg0[%c0_17, %c0_18] : memref<2x4xf32, #tpu.memory_space<vmem>>, vector<2x4xf32>
    %cst_19 = arith.constant dense<0.000000e+00> : vector<8x4xf32>
    %18 = tpu.matmul %0, %17, %cst_19 {dimension_numbers = #tpu.dot_dimension_numbers<[1], [0], [0], [1], [0, 0, 1, 1], [], []>} : vector<8x2xf32>, vector<2x4xf32>, vector<8x4xf32> -> vector<8x4xf32>
    %19 = vector.broadcast %6 : vector<8x1xf32> to vector<8x4xf32>
    %20 = arith.addf %18, %19 : vector<8x4xf32>
    %cst_20 = arith.constant dense<0.000000e+00> : vector<32x4xf32>
    %21 = tpu.matmul %3, %20, %cst_20 {dimension_numbers = #tpu.dot_dimension_numbers<[1], [0], [0], [1], [0, 0, 1, 1], [], []>} : vector<32x8xf32>, vector<8x4xf32>, vector<32x4xf32> -> vector<32x4xf32>
    %22 = vector.extract_strided_slice %21 {offsets = [0, 0], sizes = [32, 1], strides = [1, 1]} : vector<32x4xf32> to vector<32x1xf32>
    %23 = vector.broadcast %22 : vector<32x1xf32> to vector<32x16xf32>
    %24 = arith.addf %16, %23 : vector<32x16xf32>
    %cst_21 = arith.constant 0.000000e+00 : f32
    %25 = vector.broadcast %cst_21 : f32 to vector<32x16xf32>
    %26 = arith.maximumf %24, %25 : vector<32x16xf32>
    %cst_22 = arith.constant dense<0.000000e+00> : vector<4x16xf32>
    %27 = tpu.matmul %4, %26, %cst_22 {dimension_numbers = #tpu.dot_dimension_numbers<[1], [0], [0], [1], [0, 0, 1, 1], [], []>} : vector<4x32xf32>, vector<32x16xf32>, vector<4x16xf32> -> vector<4x16xf32>
    %28 = vector.broadcast %9 : vector<4x1xf32> to vector<4x16xf32>
    %29 = arith.addf %27, %28 : vector<4x16xf32>
    %cst_23 = arith.constant 0.000000e+00 : f32
    %30 = vector.broadcast %cst_23 : f32 to vector<4x16xf32>
    %31 = arith.maximumf %29, %30 : vector<4x16xf32>
    %32 = vector.extract_strided_slice %21 {offsets = [0, 1], sizes = [32, 1], strides = [1, 1]} : vector<32x4xf32> to vector<32x1xf32>
    %33 = vector.broadcast %32 : vector<32x1xf32> to vector<32x16xf32>
    %34 = arith.addf %16, %33 : vector<32x16xf32>
    %cst_24 = arith.constant 0.000000e+00 : f32
    %35 = vector.broadcast %cst_24 : f32 to vector<32x16xf32>
    %36 = arith.maximumf %34, %35 : vector<32x16xf32>
    %cst_25 = arith.constant dense<0.000000e+00> : vector<4x16xf32>
    %37 = tpu.matmul %4, %36, %cst_25 {dimension_numbers = #tpu.dot_dimension_numbers<[1], [0], [0], [1], [0, 0, 1, 1], [], []>} : vector<4x32xf32>, vector<32x16xf32>, vector<4x16xf32> -> vector<4x16xf32>
    %38 = vector.broadcast %9 : vector<4x1xf32> to vector<4x16xf32>
    %39 = arith.addf %37, %38 : vector<4x16xf32>
    %cst_26 = arith.constant 0.000000e+00 : f32
    %40 = vector.broadcast %cst_26 : f32 to vector<4x16xf32>
    %41 = arith.maximumf %39, %40 : vector<4x16xf32>
    %42 = vector.extract_strided_slice %21 {offsets = [0, 2], sizes = [32, 1], strides = [1, 1]} : vector<32x4xf32> to vector<32x1xf32>
    %43 = vector.broadcast %42 : vector<32x1xf32> to vector<32x16xf32>
    %44 = arith.addf %16, %43 : vector<32x16xf32>
    %cst_27 = arith.constant 0.000000e+00 : f32
    %45 = vector.broadcast %cst_27 : f32 to vector<32x16xf32>
    %46 = arith.maximumf %44, %45 : vector<32x16xf32>
    %cst_28 = arith.constant dense<0.000000e+00> : vector<4x16xf32>
    %47 = tpu.matmul %4, %46, %cst_28 {dimension_numbers = #tpu.dot_dimension_numbers<[1], [0], [0], [1], [0, 0, 1, 1], [], []>} : vector<4x32xf32>, vector<32x16xf32>, vector<4x16xf32> -> vector<4x16xf32>
    %48 = vector.broadcast %9 : vector<4x1xf32> to vector<4x16xf32>
    %49 = arith.addf %47, %48 : vector<4x16xf32>
    %cst_29 = arith.constant 0.000000e+00 : f32
    %50 = vector.broadcast %cst_29 : f32 to vector<4x16xf32>
    %51 = arith.maximumf %49, %50 : vector<4x16xf32>
    %52 = vector.extract_strided_slice %21 {offsets = [0, 3], sizes = [32, 1], strides = [1, 1]} : vector<32x4xf32> to vector<32x1xf32>
    %53 = vector.broadcast %52 : vector<32x1xf32> to vector<32x16xf32>
    %54 = arith.addf %16, %53 : vector<32x16xf32>
    %cst_30 = arith.constant 0.000000e+00 : f32
    %55 = vector.broadcast %cst_30 : f32 to vector<32x16xf32>
    %56 = arith.maximumf %54, %55 : vector<32x16xf32>
    %cst_31 = arith.constant dense<0.000000e+00> : vector<4x16xf32>
    %57 = tpu.matmul %4, %56, %cst_31 {dimension_numbers = #tpu.dot_dimension_numbers<[1], [0], [0], [1], [0, 0, 1, 1], [], []>} : vector<4x32xf32>, vector<32x16xf32>, vector<4x16xf32> -> vector<4x16xf32>
    %58 = vector.broadcast %9 : vector<4x1xf32> to vector<4x16xf32>
    %59 = arith.addf %57, %58 : vector<4x16xf32>
    %cst_32 = arith.constant 0.000000e+00 : f32
    %60 = vector.broadcast %cst_32 : f32 to vector<4x16xf32>
    %61 = arith.maximumf %59, %60 : vector<4x16xf32>
    %62 = vector.extract_strided_slice %31 {offsets = [0, 0], sizes = [1, 16], strides = [1, 1]} : vector<4x16xf32> to vector<1x16xf32>
    %63 = vector.extract_strided_slice %41 {offsets = [0, 0], sizes = [1, 16], strides = [1, 1]} : vector<4x16xf32> to vector<1x16xf32>
    %64 = vector.extract_strided_slice %51 {offsets = [0, 0], sizes = [1, 16], strides = [1, 1]} : vector<4x16xf32> to vector<1x16xf32>
    %65 = vector.extract_strided_slice %61 {offsets = [0, 0], sizes = [1, 16], strides = [1, 1]} : vector<4x16xf32> to vector<1x16xf32>
    %66 = tpu.concatenate %62, %63, %64, %65 in 0 : vector<1x16xf32>, vector<1x16xf32>, vector<1x16xf32>, vector<1x16xf32> -> vector<4x16xf32>
    %c88 = arith.constant 88 : index
    %c0_33 = arith.constant 0 : index
    %67 = vector.load %arg2[%c88, %c0_33] : memref<160x32xf32, #tpu.memory_space<vmem>>, vector<16x16xf32>
    %cst_34 = arith.constant dense<0.000000e+00> : vector<4x16xf32>
    %68 = tpu.matmul %66, %67, %cst_34 {dimension_numbers = #tpu.dot_dimension_numbers<[1], [0], [0], [1], [0, 0, 1, 1], [], []>} : vector<4x16xf32>, vector<16x16xf32>, vector<4x16xf32> -> vector<4x16xf32>
    %69 = vector.extract_strided_slice %31 {offsets = [1, 0], sizes = [1, 16], strides = [1, 1]} : vector<4x16xf32> to vector<1x16xf32>
    %70 = vector.extract_strided_slice %41 {offsets = [1, 0], sizes = [1, 16], strides = [1, 1]} : vector<4x16xf32> to vector<1x16xf32>
    %71 = vector.extract_strided_slice %51 {offsets = [1, 0], sizes = [1, 16], strides = [1, 1]} : vector<4x16xf32> to vector<1x16xf32>
    %72 = vector.extract_strided_slice %61 {offsets = [1, 0], sizes = [1, 16], strides = [1, 1]} : vector<4x16xf32> to vector<1x16xf32>
    %73 = tpu.concatenate %69, %70, %71, %72 in 0 : vector<1x16xf32>, vector<1x16xf32>, vector<1x16xf32>, vector<1x16xf32> -> vector<4x16xf32>
    %c104 = arith.constant 104 : index
    %c0_35 = arith.constant 0 : index
    %74 = vector.load %arg2[%c104, %c0_35] : memref<160x32xf32, #tpu.memory_space<vmem>>, vector<16x16xf32>
    %cst_36 = arith.constant dense<0.000000e+00> : vector<4x16xf32>
    %75 = tpu.matmul %73, %74, %cst_36 {dimension_numbers = #tpu.dot_dimension_numbers<[1], [0], [0], [1], [0, 0, 1, 1], [], []>} : vector<4x16xf32>, vector<16x16xf32>, vector<4x16xf32> -> vector<4x16xf32>
    %76 = arith.addf %68, %75 : vector<4x16xf32>
    %77 = vector.extract_strided_slice %31 {offsets = [2, 0], sizes = [1, 16], strides = [1, 1]} : vector<4x16xf32> to vector<1x16xf32>
    %78 = vector.extract_strided_slice %41 {offsets = [2, 0], sizes = [1, 16], strides = [1, 1]} : vector<4x16xf32> to vector<1x16xf32>
    %79 = vector.extract_strided_slice %51 {offsets = [2, 0], sizes = [1, 16], strides = [1, 1]} : vector<4x16xf32> to vector<1x16xf32>
    %80 = vector.extract_strided_slice %61 {offsets = [2, 0], sizes = [1, 16], strides = [1, 1]} : vector<4x16xf32> to vector<1x16xf32>
    %81 = tpu.concatenate %77, %78, %79, %80 in 0 : vector<1x16xf32>, vector<1x16xf32>, vector<1x16xf32>, vector<1x16xf32> -> vector<4x16xf32>
    %c120 = arith.constant 120 : index
    %c0_37 = arith.constant 0 : index
    %82 = vector.load %arg2[%c120, %c0_37] : memref<160x32xf32, #tpu.memory_space<vmem>>, vector<16x16xf32>
    %cst_38 = arith.constant dense<0.000000e+00> : vector<4x16xf32>
    %83 = tpu.matmul %81, %82, %cst_38 {dimension_numbers = #tpu.dot_dimension_numbers<[1], [0], [0], [1], [0, 0, 1, 1], [], []>} : vector<4x16xf32>, vector<16x16xf32>, vector<4x16xf32> -> vector<4x16xf32>
    %84 = arith.addf %76, %83 : vector<4x16xf32>
    %85 = vector.extract_strided_slice %31 {offsets = [3, 0], sizes = [1, 16], strides = [1, 1]} : vector<4x16xf32> to vector<1x16xf32>
    %86 = vector.extract_strided_slice %41 {offsets = [3, 0], sizes = [1, 16], strides = [1, 1]} : vector<4x16xf32> to vector<1x16xf32>
    %87 = vector.extract_strided_slice %51 {offsets = [3, 0], sizes = [1, 16], strides = [1, 1]} : vector<4x16xf32> to vector<1x16xf32>
    %88 = vector.extract_strided_slice %61 {offsets = [3, 0], sizes = [1, 16], strides = [1, 1]} : vector<4x16xf32> to vector<1x16xf32>
    %89 = tpu.concatenate %85, %86, %87, %88 in 0 : vector<1x16xf32>, vector<1x16xf32>, vector<1x16xf32>, vector<1x16xf32> -> vector<4x16xf32>
    %c136 = arith.constant 136 : index
    %c0_39 = arith.constant 0 : index
    %90 = vector.load %arg2[%c136, %c0_39] : memref<160x32xf32, #tpu.memory_space<vmem>>, vector<16x16xf32>
    %cst_40 = arith.constant dense<0.000000e+00> : vector<4x16xf32>
    %91 = tpu.matmul %89, %90, %cst_40 {dimension_numbers = #tpu.dot_dimension_numbers<[1], [0], [0], [1], [0, 0, 1, 1], [], []>} : vector<4x16xf32>, vector<16x16xf32>, vector<4x16xf32> -> vector<4x16xf32>
    %92 = arith.addf %84, %91 : vector<4x16xf32>
    %93 = vector.broadcast %5 : vector<1x16xf32> to vector<4x16xf32>
    %94 = arith.addf %92, %93 : vector<4x16xf32>
    %cst_41 = arith.constant dense<0xFF800000> : vector<4xf32>
    %95 = vector.multi_reduction <maximumf>, %94, %cst_41 [1] : vector<4x16xf32> to vector<4xf32>
    %96 = vector.shape_cast %95 : vector<4xf32> to vector<4x1xf32>
    %97 = vector.broadcast %96 : vector<4x1xf32> to vector<4x16xf32>
    %98 = arith.subf %94, %97 : vector<4x16xf32>
    %99 = math.exp %98 : vector<4x16xf32>
    %cst_42 = arith.constant dense<0.000000e+00> : vector<4xf32>
    %100 = vector.multi_reduction <add>, %99, %cst_42 [1] : vector<4x16xf32> to vector<4xf32>
    %101 = vector.shape_cast %100 : vector<4xf32> to vector<4x1xf32>
    %102 = tpu.reciprocal %101 {approx = true} : vector<4x1xf32> -> vector<4x1xf32>
    %103 = arith.mulf %101, %102 : vector<4x1xf32>
    %cst_43 = arith.constant 2.000000e+00 : f32
    %104 = vector.broadcast %cst_43 : f32 to vector<4x1xf32>
    %105 = arith.subf %104, %103 : vector<4x1xf32>
    %106 = arith.mulf %102, %105 : vector<4x1xf32>
    %107 = vector.broadcast %106 : vector<4x1xf32> to vector<4x16xf32>
    %108 = arith.mulf %99, %107 : vector<4x16xf32>
    %109 = arith.mulf %66, %108 : vector<4x16xf32>
    %cst_44 = arith.constant dense<0.000000e+00> : vector<4xf32>
    %110 = vector.multi_reduction <add>, %109, %cst_44 [1] : vector<4x16xf32> to vector<4xf32>
    %111 = vector.shape_cast %110 : vector<4xf32> to vector<4x1xf32>
    %112 = arith.mulf %73, %108 : vector<4x16xf32>
    %cst_45 = arith.constant dense<0.000000e+00> : vector<4xf32>
    %113 = vector.multi_reduction <add>, %112, %cst_45 [1] : vector<4x16xf32> to vector<4xf32>
    %114 = vector.shape_cast %113 : vector<4xf32> to vector<4x1xf32>
    %115 = arith.mulf %81, %108 : vector<4x16xf32>
    %cst_46 = arith.constant dense<0.000000e+00> : vector<4xf32>
    %116 = vector.multi_reduction <add>, %115, %cst_46 [1] : vector<4x16xf32> to vector<4xf32>
    %117 = vector.shape_cast %116 : vector<4xf32> to vector<4x1xf32>
    %118 = arith.mulf %89, %108 : vector<4x16xf32>
    %cst_47 = arith.constant dense<0.000000e+00> : vector<4xf32>
    %119 = vector.multi_reduction <add>, %118, %cst_47 [1] : vector<4x16xf32> to vector<4xf32>
    %120 = vector.shape_cast %119 : vector<4xf32> to vector<4x1xf32>
    %121 = tpu.concatenate %111, %114, %117, %120 in 1 : vector<4x1xf32>, vector<4x1xf32>, vector<4x1xf32>, vector<4x1xf32> -> vector<4x4xf32>
    %c0_48 = arith.constant 0 : index
    %c0_49 = arith.constant 0 : index
    %122 = vector.load %arg4[%c0_48, %c0_49] : memref<4x4xf32, #tpu.memory_space<vmem>>, vector<4x4xf32>
    tpu.vector_store %arg4[%c0_48, %c0_49], %121 {strides = array<i32>} : memref<4x4xf32, #tpu.memory_space<vmem>>, vector<4x4xf32>,
    return
  }
}

</mosaic_0001>

<bundles_post_ra>
// kernel: tpu_custom_call.1
= control target key start
LH: loop header
LB: loop body
LE: loop exit
PB: predicated region body
PF: predicated region fallthrough
CT: control target
= control target key end

     0   :  { %v1435_v1 = vmov 0.0   ;;  %vm1436_vm0 = vmmov 0   ;;  %v1437_v4 = vmov 0   ;;  %s1667_s0 = inlined_call_operand.vmem [shape: f32[2,4], index: 0, kind: input, shape index: {}]   ;;  %s1668_s1 = inlined_call_operand.vmem [shape: f32[32,16], index: 1, kind: input, shape index: {}]   ;;  %s1669_s2 = inlined_call_operand.vmem [shape: f32[160,32], index: 2, kind: input, shape index: {}]   ;;  %s1670_s3 = inlined_call_operand.vmem [shape: f32[56,1], index: 3, kind: input, shape index: {}]   ;;  %s1671_s4 = inlined_call_operand.hbm [shape: f32[4,4], index: 4, kind: output, shape index: {}]  }
   0x1   :  { %v40_v0 = vld [vmem:[%s1668_s1 + $0x18] sm:$0xff]  ;;  %1282 = vmatprep.subr.mxu0 %v1435_v1  ;;  %v39_v2 = vld [vmem:[%s1668_s1 + $0x10] sm:$0xff]  ;;  %1290 = vmatprep.mubr.msk.f32.mxu0 %vm1436_vm0, %v1435_v1  ;;  %v31_v3 = vld [vmem:[%s1670_s3 + $0x8] sm:$0xff] }
   0x2   :  { %1283 = vmatpush3.msra.mxu0 %v40_v0  ;;  %1393 = vset.pattern.permute.xlu0 %v1437_v4 }
   0x3   :  { %9 = vsyncpa [#allocation3], 0  ;;  %1284 = vmatprep.subr.mxu0 %v1435_v1  ;;  %v38_v5 = vld [vmem:[%s1668_s1 + $0x8] sm:$0xff]  ;;  %43 = vperm.xlu0 %1393, %v31_v3   ;;  %v30_v6 = vld [vmem:[%s1670_s3] sm:$0xff]  ;;  %vm46_vm1 = vcmask 261120   ;;  %vm140_vm2 = vcmask 64512  }
   0x4   :  { %1285 = vmatpush3.msra.mxu0 %v39_v2  ;;  %1394 = vset.pattern.permute.xlu1 %v1437_v4  ;;  %v37_v7 = vld [vmem:[%s1668_s1] sm:$0xff]  ;;  %v19_v8 = vld [vmem:[%s1669_s2 + $0x8] sm:$0xff]  ;;  %v33_v9 = vld [vmem:[%s1670_s3 + $0x18] sm:$0xff]  ;;  %vm248_vm3 = vcmask 1041408   ;;  %vm244_vm4 = vcmask 15360   ;;  %v1438_v24 = vmov 1  }
   0x5   :  { %1286 = vmatprep.subr.mxu0 %v1435_v1  ;;  %v20_v10 = vld [vmem:[%s1669_s2 + $0x10] sm:$0xff]  ;;  %v35_v11 = vld [vmem:[%s1670_s3 + $0x28] sm:$0xff]  ;;  %v34_v12 = vld [vmem:[%s1670_s3 + $0x20] sm:$0xff]  ;;  %v1439_v39 = vmov 2   ;;  %v1440_v40 = vmov 3   ;;  %vm820_vm5 = vcmask 1040384  }
   0x6   :  { %1287 = vmatpush3.msra.mxu0 %v38_v5  ;;  %1295 = vmatprep.mubr.msk.f32.mxu1 %vm140_vm2, %v20_v10  ;;  %v32_v13 = vld [vmem:[%s1670_s3 + $0x10] sm:$0xff]  ;;  %v21_v18 = vld [vmem:[%s1669_s2 + $0x18] sm:$0xff]  ;;  %v22_v19 = vld [vmem:[%s1669_s2 + $0x20] sm:$0xff]  ;;  %vm839_vm6 = vcmask 130048   ;;  %vm823_vm7 = vcmask 1042432   ;;  %vm1161_vm8 = vcmask 125952  }
   0x7   :  { %1288 = vmatprep.subr.mxu0 %v1435_v1  ;;  %241 = vperm.xlu0 %1393, %v30_v6   ;;  %v238_v20 = vld [vmem:[%s1667_s0] sm:$0x3]  ;;  %v23_v21 = vld [vmem:[%s1669_s2 + $0x28] sm:$0xff]  ;;  %v24_v23 = vld [vmem:[%s1669_s2 + $0x30] sm:$0xff]  ;;  %vm1192_vm9 = vcmask 7168   ;;  %vm1195_vm10 = vcmask 23552  }
   0x8   :  { %1289 = vmatpush3.msra.mxu0 %v37_v7  ;;  %137 = vperm.xlu1 %1394, %v35_v11   ;;  %v18_v22 = vld [vmem:[%s1669_s2] sm:$0xff]  ;;  %v25_v33 = vld [vmem:[%s1669_s2 + $0x38] sm:$0xff]  ;;  %v27_v35 = vld [vmem:[%s1669_s2 + $0x48] sm:$0xff]  ;;  %vm1197_vm11 = vcmask 27648  }
   0x9   :  { %1291 = vmatmul.mubr.msk.f32.vlgmr.msra.gmra.mxu0 %vm46_vm1, %v19_v8  ;;  %v26_v34 = vld [vmem:[%s1669_s2 + $0x40] sm:$0xff]  ;;  %v36_v42 = vld [vmem:[%s1670_s3 + $0x30] sm:$0xf] }
   0xa   :  { %1308 = vmatprep.mubr.msk.f32.mxu0 %vm140_vm2, %v24_v23 }
   0xb   :  { %127 = vperm.xlu0 %1393, %v33_v9  }
   0xc   :  { %132 = vperm.xlu1 %1394, %v34_v12  }
   0xf   :  { %1395 = vset.pattern.permute.xlu0 %v1438_v24 }
  0x10   :  { %122 = vperm.xlu1 %1394, %v32_v13  }
  0x7e   :  { %v44_v14 = vpop.permute.xlu0 %43 }
  0x82   :  { %v242_v29 = vpop.permute.xlu0 %241 }
  0x83   :  { %v138_v43 = vpop.permute.xlu1 %137 }
  0x86   :  { %v128_v45 = vpop.permute.xlu0 %127 }
  0x87   :  { %v133_v44 = vpop.permute.xlu1 %132 }
  0x8b   :  { %v123_v46 = vpop.permute.xlu1 %122 }
  0xc9   :  { %v116_v15 = vpop.f32.mrf.mxu0 }
  0xca   :  { %v117_v16 = vadd.f32 %v116_v15, %v44_v14 }
  0xcb   :  { %v1292_v17 = vpop.f32.mrf.mxu0 }
  0xcc   :  { %1293 = vmatprep.subr.mxu1 %v117_v16 }
  0xcd   :  { %1294 = vmatpush3.msra.mxu1 %v117_v16 }
  0xce   :  { %1296 = vmatmul.mubr.msk.f32.vlgmr.msra.gmra.mxu1 %vm140_vm2, %v21_v18  ;;  %1301 = vmatprep.subr.mxu1 %v1435_v1  ;;  %v28_v18 = vld [vmem:[%s1669_s2 + $0x50] sm:$0xf] }
  0xcf   :  { %1298 = vmatprep.mubr.msk.f32.mxu1 %vm140_vm2, %v22_v19  ;;  %1302 = vmatpush3.msk.msra.mxu1 %vm248_vm3, %v238_v20 }
  0xd0   :  { %1314 = vmatprep.subr.mxu1 %v1435_v1 }
  0xd2   :  { %1299 = vmatmul.mubr.msk.f32.gmra.mxu1 %vm140_vm2, %v23_v21 }
  0xd3   :  { %1303 = vmatprep.mubr.msk.f32.mxu1 %vm1436_vm0, %v1435_v1 }
  0xd6   :  { %1304 = vmatmul.mubr.msk.f32.vlgmr.msra.gmra.mxu1 %vm244_vm4, %v18_v22 }
  0xd7   :  { %1322 = vmatprep.mubr.msk.f32.mxu1 %vm1436_vm0, %v1435_v1 }
 0x18e   :  { %v1543_v25 = vpop.f32.mrf.mxu1 }
 0x18f   :  { %v225_v60 = vadd.f32 %v1543_v25, %v128_v45 }
 0x190   :  { %v1545_v26 = vpop.f32.mrf.mxu1 }
 0x191   :  { %v220_v62 = vadd.f32 %v1545_v26, %v123_v46 }
 0x192   :  { %v1300_v27 = vpop.f32.mrf.mxu1 }
 0x193   :  { %v235_v51 = vadd.f32 %v1300_v27, %v138_v43 }
 0x194   :  { %v1547_v28 = vpop.f32.mrf.mxu1 }
 0x195   :  { %v230_v61 = vadd.f32 %v1547_v28, %v133_v44 }
 0x196   :  { %v318_v30 = vpop.f32.mrf.mxu1 }
 0x197   :  { %v319_v31 = vadd.f32 %v318_v30, %v242_v29 }
 0x198   :  { %v1305_v32 = vpop.f32.mrf.mxu1 }
 0x199   :  { %1306 = vmatprep.subr.mxu0 %v319_v31 }
 0x19a   :  { %1307 = vmatpush3.msra.mxu0 %v319_v31 }
 0x19b   :  { %1309 = vmatmul.mubr.msk.f32.vlgmr.msra.gmra.mxu0 %vm140_vm2, %v25_v33  ;;  %1325 = vmatprep.subr.mxu0 %v1435_v1 }
 0x19c   :  { %1311 = vmatprep.mubr.msk.f32.mxu0 %vm140_vm2, %v26_v34 }
 0x19f   :  { %1312 = vmatmul.mubr.msk.f32.gmra.mxu0 %vm140_vm2, %v27_v35 }
 0x1a0   :  { %1333 = vmatprep.mubr.msk.f32.mxu0 %vm1436_vm0, %v1435_v1 }
 0x25b   :  { %v1310_v36 = vpop.f32.mrf.mxu0 }
 0x25c   :  { %531 = vperm.xlu0 %1395, %v1310_v36   ;;  %426 = vperm.xlu1 %1394, %v1310_v36  }
 0x25d   :  { %v400_v37 = vpop.f32.mrf.mxu0 }
 0x25f   :  { %v1313_v38 = vpop.f32.mrf.mxu0 }
 0x260   :  { %527 = vperm.xlu0 %1395, %v400_v37   ;;  %421 = vperm.xlu1 %1394, %v400_v37  }
 0x261   :  { %v410_v41 = vpop.f32.mrf.mxu0 }
 0x264   :  { %1396 = vset.pattern.permute.xlu0 %v1437_v4  ;;  %1397 = vset.pattern.permute.xlu1 %v1438_v24 }
 0x265   :  { %539 = vperm.xlu1 %1397, %v1313_v38   ;;  %436 = vperm.xlu0 %1396, %v1313_v38  }
 0x269   :  { %1398 = vset.pattern.permute.xlu1 %v1439_v39  ;;  %1399 = vset.pattern.permute.xlu0 %v1440_v40 }
 0x26a   :  { %634 = vperm.xlu1 %1398, %v1313_v38   ;;  %729 = vperm.xlu0 %1399, %v1313_v38   ;;  %v826_v38 = vld [vmem:[%s1669_s2 + $0x60] sm:$0xff] }
 0x26e   :  { %1400 = vset.pattern.permute.xlu1 %v1437_v4  ;;  %1401 = vset.pattern.permute.xlu0 %v1438_v24 }
 0x26f   :  { %535 = vperm.xlu0 %1401, %v410_v41   ;;  %431 = vperm.xlu1 %1400, %v410_v41  }
 0x273   :  { %1402 = vset.pattern.permute.xlu0 %v1439_v39  ;;  %1403 = vset.pattern.permute.xlu1 %v1440_v40 }
 0x274   :  { %626 = vperm.xlu0 %1402, %v1310_v36   ;;  %721 = vperm.xlu1 %1403, %v1310_v36  }
 0x278   :  { %1407 = vset.pattern.permute.xlu0 %v1440_v40  ;;  %1404 = vset.pattern.permute.xlu1 %v1439_v39 }
 0x279   :  { %717 = vperm.xlu0 %1407, %v400_v37   ;;  %630 = vperm.xlu1 %1404, %v410_v41  }
 0x27d   :  { %1405 = vset.pattern.permute.xlu1 %v1440_v40  ;;  %v825_v40 = vld [vmem:[%s1669_s2 + $0x58] sm:$0xff] }
 0x27e   :  { %725 = vperm.xlu1 %1405, %v410_v41  }
 0x282   :  { %1406 = vset.pattern.permute.xlu1 %v1439_v39  ;;  %v837_v39 = vld [vmem:[%s1669_s2 + $0x68] sm:$0xff] }
 0x283   :  { %622 = vperm.xlu1 %1406, %v400_v37   ;;  %v838_v37 = vld [vmem:[%s1669_s2 + $0x70] sm:$0xff] }
 0x287   :  { %1408 = vset.pattern.permute.xlu1 %v1437_v4 }
 0x288   :  { %449 = vperm.xlu1 %1408, %v36_v42  }
 0x2d7   :  { %v532_v47 = vpop.permute.xlu0 %531  ;;  %v427_v48 = vpop.permute.xlu1 %426 }
 0x2d8   :  { %v543_v2 = vadd.f32 %v532_v47, %v225_v60  ;;  %v440_v3 = vadd.f32 %v427_v48, %v225_v60 }
 0x2da   :  { %v547_v10 = vmax.f32 %v543_v2, 0.0  ;;  %v444_v11 = vmax.f32 %v440_v3, 0.0 }
 0x2db   :  { %v528_v49 = vpop.permute.xlu0 %527  ;;  %v422_v50 = vpop.permute.xlu1 %421 }
 0x2dc   :  { %v542_v6 = vadd.f32 %v528_v49, %v220_v62  ;;  %v439_v7 = vadd.f32 %v422_v50, %v220_v62 }
 0x2de   :  { %v546_v15 = vmax.f32 %v542_v6, 0.0  ;;  %v443_v16 = vmax.f32 %v439_v7, 0.0 }
 0x2e0   :  { %v540_v52 = vpop.permute.xlu1 %539  ;;  %v437_v53 = vpop.permute.xlu0 %436 }
 0x2e1   :  { %v545_v54 = vadd.f32 %v540_v52, %v235_v51  ;;  %v442_v55 = vadd.f32 %v437_v53, %v235_v51 }
 0x2e3   :  { %v549_v56 = vmax.f32 %v545_v54, 0.0  ;;  %v446_v57 = vmax.f32 %v442_v55, 0.0 }
 0x2e5   :  { %1326 = vmatpush3.msra.mxu0 %v549_v56  ;;  %v635_v58 = vpop.permute.xlu1 %634  ;;  %1315 = vmatpush3.msra.mxu1 %v446_v57  ;;  %v730_v59 = vpop.permute.xlu0 %729 }
 0x2e6   :  { %1316 = vmatprep.subr.mxu1 %v1435_v1  ;;  %1327 = vmatprep.subr.mxu0 %v1435_v1  ;;  %v640_v13 = vadd.f32 %v635_v58, %v235_v51  ;;  %v735_v14 = vadd.f32 %v730_v59, %v235_v51 }
 0x2e8   :  { %v644_v19 = vmax.f32 %v640_v13, 0.0  ;;  %v739_v20 = vmax.f32 %v735_v14, 0.0 }
 0x2ea   :  { %v536_v63 = vpop.permute.xlu0 %535  ;;  %v432_v0 = vpop.permute.xlu1 %431 }
 0x2eb   :  { %v544_v4 = vadd.f32 %v536_v63, %v230_v61  ;;  %v441_v5 = vadd.f32 %v432_v0, %v230_v61 }
 0x2ed   :  { %v548_v8 = vmax.f32 %v544_v4, 0.0  ;;  %v445_v9 = vmax.f32 %v441_v5, 0.0 }
 0x2ef   :  { %1328 = vmatpush3.msra.mxu0 %v548_v8  ;;  %1317 = vmatpush3.msra.mxu1 %v445_v9  ;;  %v722_v12 = vpop.permute.xlu1 %721  ;;  %v627_v17 = vpop.permute.xlu0 %626 }
 0x2f0   :  { %1318 = vmatprep.subr.mxu1 %v1435_v1  ;;  %1329 = vmatprep.subr.mxu0 %v1435_v1  ;;  %v638_v22 = vadd.f32 %v627_v17, %v225_v60  ;;  %v733_v28 = vadd.f32 %v722_v12, %v225_v60 }
 0x2f1   :  { %1319 = vmatpush3.msra.mxu1 %v444_v11  ;;  %1330 = vmatpush3.msra.mxu0 %v547_v10  ;;  %v996_v10 = vld [vmem:[%s1669_s2 + $0x80] sm:$0xff]  ;;  %v1081_v11 = vld [vmem:[%s1669_s2 + $0x90] sm:$0xff] }
 0x2f2   :  { %1320 = vmatprep.subr.mxu1 %v1435_v1  ;;  %1331 = vmatprep.subr.mxu0 %v1435_v1  ;;  %v642_v25 = vmax.f32 %v638_v22, 0.0  ;;  %v737_v32 = vmax.f32 %v733_v28, 0.0 }
 0x2f3   :  { %1321 = vmatpush3.msra.mxu1 %v443_v16  ;;  %1332 = vmatpush3.msra.mxu0 %v546_v15  ;;  %v995_v15 = vld [vmem:[%s1669_s2 + $0x78] sm:$0xff] }
 0x2f4   :  { %1347 = vmatprep.subr.mxu0 %v1435_v1  ;;  %1336 = vmatprep.subr.mxu1 %v1435_v1  ;;  %v631_v21 = vpop.permute.xlu1 %630  ;;  %v718_v26 = vpop.permute.xlu0 %717 }
 0x2f5   :  { %v639_v23 = vadd.f32 %v631_v21, %v230_v61  ;;  %1323 = vmatmul.mubr.msk.f32.vlgmr.msra.gmra.mxu1 %vm46_vm1, %v28_v18  ;;  %1334 = vmatmul.mubr.msk.f32.vlgmr.msra.gmra.mxu0 %vm46_vm1, %v28_v18  ;;  %v732_v30 = vadd.f32 %v718_v26, %v220_v62 }
 0x2f6   :  { %1337 = vmatpush3.msra.mxu1 %v644_v19  ;;  %1348 = vmatpush3.msra.mxu0 %v739_v20 }
 0x2f7   :  { %v643_v24 = vmax.f32 %v639_v23, 0.0  ;;  %1338 = vmatprep.subr.mxu1 %v1435_v1  ;;  %1349 = vmatprep.subr.mxu0 %v1435_v1  ;;  %v736_v35 = vmax.f32 %v732_v30, 0.0 }
 0x2f8   :  { %1355 = vmatprep.mubr.msk.f32.mxu0 %vm1436_vm0, %v1435_v1  ;;  %1344 = vmatprep.mubr.msk.f32.mxu1 %vm1436_vm0, %v1435_v1 }
 0x2f9   :  { %1339 = vmatpush3.msra.mxu1 %v643_v24  ;;  %v726_v27 = vpop.permute.xlu1 %725 }
 0x2fa   :  { %v734_v29 = vadd.f32 %v726_v27, %v230_v61  ;;  %1340 = vmatprep.subr.mxu1 %v1435_v1 }
 0x2fb   :  { %1341 = vmatpush3.msra.mxu1 %v642_v25 }
 0x2fc   :  { %v738_v31 = vmax.f32 %v734_v29, 0.0  ;;  %1342 = vmatprep.subr.mxu1 %v1435_v1 }
 0x2fe   :  { %1350 = vmatpush3.msra.mxu0 %v738_v31  ;;  %v623_v33 = vpop.permute.xlu1 %622 }
 0x2ff   :  { %v637_v34 = vadd.f32 %v623_v33, %v220_v62  ;;  %1351 = vmatprep.subr.mxu0 %v1435_v1 }
 0x300   :  { %1352 = vmatpush3.msra.mxu0 %v737_v32 }
 0x301   :  { %v641_v36 = vmax.f32 %v637_v34, 0.0  ;;  %1353 = vmatprep.subr.mxu0 %v1435_v1 }
 0x302   :  { %1354 = vmatpush3.msra.mxu0 %v736_v35 }
 0x303   :  { %1343 = vmatpush3.msra.mxu1 %v641_v36  ;;  %1356 = vmatmul.mubr.msk.f32.vlgmr.msra.gmra.mxu0 %vm46_vm1, %v28_v18  ;;  %v450_v45 = vpop.permute.xlu1 %449 }
 0x304   :  { %1345 = vmatmul.mubr.msk.f32.vlgmr.msra.gmra.mxu1 %vm46_vm1, %v28_v18  ;;  %1358 = vmatprep.subr.mxu1 %v1435_v1  ;;  %v1080_v18 = vld [vmem:[%s1669_s2 + $0x88] sm:$0xff] }
 0x305   :  { %1365 = vmatprep.subr.mxu0 %v1435_v1  ;;  %1362 = vmatprep.mubr.msk.f32.mxu1 %vm1436_vm0, %v1435_v1 }
 0x306   :  { %1369 = vmatprep.mubr.msk.f32.mxu0 %vm1436_vm0, %v1435_v1  ;;  %1359 = vmatpush3.msra.mxu1 %v838_v37 }
 0x307   :  { %1366 = vmatpush3.msra.mxu0 %v826_v38  ;;  %1360 = vmatprep.subr.mxu1 %v1435_v1 }
 0x308   :  { %1367 = vmatprep.subr.mxu0 %v1435_v1  ;;  %1361 = vmatpush3.msra.mxu1 %v837_v39 }
 0x309   :  { %1368 = vmatpush3.msra.mxu0 %v825_v40  ;;  %1372 = vmatprep.subr.mxu1 %v1435_v1 }
 0x30a   :  { %1379 = vmatprep.subr.mxu0 %v1435_v1 }
 0x3b5   :  { %v616_v41 = vpop.f32.mrf.mxu0  ;;  %v521_v42 = vpop.f32.mrf.mxu1 }
 0x3b6   :  { %v617_v46 = vadd.f32 %v616_v41, %v450_v45  ;;  %v522_v47 = vadd.f32 %v521_v42, %v450_v45 }
 0x3b7   :  { %v1324_v43 = vpop.f32.mrf.mxu1  ;;  %v1335_v44 = vpop.f32.mrf.mxu0 }
 0x3b8   :  { %v620_v48 = vmax.f32 %v617_v46, 0.0  ;;  %v525_v49 = vmax.f32 %v522_v47, 0.0 }
 0x3ba   :  { %v812_v53 = vrot.slane %v620_v48, 7  ;;  %v828_v56 = vrot.slane %v525_v49, 1  ;;  %v988_v60 = vrot.slane %v620_v48, 1  ;;  %v1073_v61 = vrot.slane %v620_v48, 2 }
 0x3bb   :  { %v986_v62 = vrot.slane %v525_v49, 2  ;;  %v1071_v0 = vrot.slane %v525_v49, 3 }
 0x3bc   :  { %v821_v63 = vsel %vm820_vm5, %v525_v49, %v812_v53  ;;  %v834_v7 = vsel %vm820_vm5, %v828_v56, %v620_v48 }
 0x3bd   :  { %v992_v16 = vsel %vm820_vm5, %v986_v62, %v988_v60  ;;  %v1077_v17 = vsel %vm820_vm5, %v1071_v0, %v1073_v61 }
 0x3c3   :  { %v806_v50 = vpop.f32.mrf.mxu0 }
 0x3c4   :  { %v807_v51 = vadd.f32 %v806_v50, %v450_v45  ;;  %v711_v52 = vpop.f32.mrf.mxu1 }
 0x3c5   :  { %v712_v54 = vadd.f32 %v711_v52, %v450_v45  ;;  %v1357_v55 = vpop.f32.mrf.mxu0 }
 0x3c6   :  { %v810_v57 = vmax.f32 %v807_v51, 0.0  ;;  %v1346_v58 = vpop.f32.mrf.mxu1 }
 0x3c7   :  { %v715_v59 = vmax.f32 %v712_v54, 0.0 }
 0x3c8   :  { %v818_v4 = vrot.slane %v810_v57, 5  ;;  %v832_v5 = vrot.slane %v810_v57, 6  ;;  %v990_v14 = vrot.slane %v810_v57, 7 }
 0x3c9   :  { %v815_v2 = vrot.slane %v715_v59, 6  ;;  %v830_v3 = vrot.slane %v715_v59, 7  ;;  %v1075_v6 = vrot.slane %v715_v59, 1  ;;  %v993_v19 = vsel %vm248_vm3, %v992_v16, %v715_v59 }
 0x3ca   :  { %v994_v21 = vsel %vm823_vm7, %v993_v19, %v990_v14 }
 0x3cb   :  { %v835_v8 = vsel %vm248_vm3, %v834_v7, %v830_v3  ;;  %v822_v9 = vsel %vm248_vm3, %v821_v63, %v815_v2  ;;  %v1078_v20 = vsel %vm248_vm3, %v1077_v17, %v1075_v6 }
 0x3cc   :  { %v836_v12 = vsel %vm823_vm7, %v835_v8, %v832_v5  ;;  %v824_v13 = vsel %vm823_vm7, %v822_v9, %v818_v4  ;;  %v1079_v22 = vsel %vm823_vm7, %v1078_v20, %v810_v57 }
 0x3cd   :  { %1363 = vmatmul.mubr.msk.f32.vlgmr.msra.gmra.mxu1 %vm839_vm6, %v836_v12  ;;  %1370 = vmatmul.mubr.msk.f32.vlgmr.msra.gmra.mxu0 %vm839_vm6, %v824_v13 }
 0x3ce   :  { %1373 = vmatpush3.msra.mxu1 %v996_v10  ;;  %1380 = vmatpush3.msra.mxu0 %v1081_v11 }
 0x3cf   :  { %1374 = vmatprep.subr.mxu1 %v1435_v1  ;;  %1381 = vmatprep.subr.mxu0 %v1435_v1 }
 0x3d0   :  { %1375 = vmatpush3.msra.mxu1 %v995_v15  ;;  %1376 = vmatprep.mubr.msk.f32.mxu1 %vm1436_vm0, %v1435_v1 }
 0x3d1   :  { %1382 = vmatpush3.msra.mxu0 %v1080_v18  ;;  %1383 = vmatprep.mubr.msk.f32.mxu0 %vm1436_vm0, %v1435_v1  ;;  %v1232_v1 = vld [vmem:[%s1669_s2 + $0x98] ss:$0 sm:$0xff]  ;;  %s1441_s2 = smov [#allocation2]  }
 0x3d2   :  { %1377 = vmatmul.mubr.msk.f32.vlgmr.msra.gmra.mxu1 %vm839_vm6, %v994_v21  ;;  %1384 = vmatmul.mubr.msk.f32.vlgmr.msra.gmra.mxu0 %vm839_vm6, %v1079_v22  ;;  %s1205_s22 = sshll.u32 %s1441_s2, 4  ;;  %s1206_s22 = int_to_ptr.vmem [resolvable:$true] %s1205_s22 }
 0x3d3   :  { %s1413_s23 = scalar_lea.vmem %s1206_s22, 64  ;;  %p1418_p1 = scmp.lt.s32.totalorder %s1206_s22, %s1206_s22 }
 0x3d4   :  { %p1414_p0 = scmp.ne.s32.totalorder %s1206_s22, %s1413_s23  ;;  %p1419_p2 = scmp.lt.s32.totalorder %s1413_s23, %s1413_s23 }
 0x3d6   :  { %p1420_p3 = por %p1419_p2, %p1418_p1 }
 0x3d8   :  { %p1421_p4 = pnand %p1420_p3, %p1414_p0 }
 0x48d   :  { %v909_v23 = vpop.f32.mrf.mxu1  ;;  %v982_v24 = vpop.f32.mrf.mxu0 }
 0x48e   :  { %v983_v27 = vadd.f32 %v982_v24, %v909_v23 }
 0x48f   :  { %v1364_v25 = vpop.f32.mrf.mxu1  ;;  %v1371_v26 = vpop.f32.mrf.mxu0 }
 0x492   :  { %v1066_v28 = vpop.f32.mrf.mxu1  ;;  %v1151_v29 = vpop.f32.mrf.mxu0 }
 0x493   :  { %v1070_v30 = vadd.f32 %v1066_v28, %v983_v27 }
 0x494   :  { %v1378_v31 = vpop.f32.mrf.mxu1  ;;  %v1385_v32 = vpop.f32.mrf.mxu0 }
 0x495   :  { %v1155_v33 = vadd.f32 %v1151_v29, %v1070_v30 }
 0x497   :  { %v1160_v34 = vadd.f32 %v1232_v1, %v1155_v33 }
 0x499   :  { %v1162_v35 = vsel %vm1161_vm8, %v1160_v34, -inf }
 0x49a   :  { %1163 = vmax.xlane.f32.xlu1 %v1162_v35 }
 0x523   :  { %v1164_v36 = vpop.xlane.xlu1 %1163 }
 0x524   :  { %v1165_v37 = vsub.f32 %v1160_v34, %v1164_v36 }
 0x526   :  { %v1166_v38 = vmul.f32 1.442695, %v1165_v37 }
 0x528   :  { %1409 = vpow2.f32 %v1166_v38 }
 0x535   :  { %v1410_v39 = vpop.eup %1409 }
 0x536   :  { %v1168_v40 = vsel %vm1161_vm8, %v1410_v39, 0.0 }
 0x537   :  { %1169 = vadd.xlane.f32.xlu0 %v1168_v40 }
 0x5c0   :  { %v1170_v41 = vpop.xlane.xlu0 %1169 }
 0x5c1   :  { %1411 = vrcp.f32 %v1170_v41 }
 0x5ce   :  { %v1412_v42 = vpop.eup %1411 }
 0x5cf   :  { %v1172_v43 = vmul.f32 %v1412_v42, %v1170_v41 }
 0x5d1   :  { %v1173_v44 = vsub.f32 2.0, %v1172_v43 }
 0x5d3   :  { %v1174_v45 = vmul.f32 %v1412_v42, %v1173_v44 }
 0x5d5   :  { %v1175_v46 = vmul.f32 %v1410_v39, %v1174_v45 }
 0x5d7   :  { %v1180_v47 = vmul.f32 %v1175_v46, %v836_v12  ;;  %v1176_v48 = vmul.f32 %v1175_v46, %v824_v13  ;;  %v1188_v51 = vmul.f32 %v1175_v46, %v1079_v22  ;;  %v1184_v52 = vmul.f32 %v1175_v46, %v994_v21 }
 0x5d9   :  { %v1181_v49 = vsel %vm1161_vm8, %v1180_v47, 0.0  ;;  %v1177_v50 = vsel %vm1161_vm8, %v1176_v48, 0.0  ;;  %v1189_v53 = vsel %vm1161_vm8, %v1188_v51, 0.0  ;;  %v1185_v54 = vsel %vm1161_vm8, %v1184_v52, 0.0 }
 0x5da   :  { %1182 = vadd.xlane.f32.xlu1 %v1181_v49  ;;  %1178 = vadd.xlane.f32.xlu0 %v1177_v50 }
 0x5de   :  { %1190 = vadd.xlane.f32.xlu1 %v1189_v53  ;;  %1186 = vadd.xlane.f32.xlu0 %v1185_v54 }
 0x663   :  { %v1183_v55 = vpop.xlane.xlu1 %1182  ;;  %v1179_v56 = vpop.xlane.xlu0 %1178 }
 0x664   :  { %v1193_v57 = vsel %vm1192_vm9, %v1179_v56, %v1183_v55 }
 0x667   :  { %v1191_v58 = vpop.xlane.xlu1 %1190  ;;  %v1187_v59 = vpop.xlane.xlu0 %1186 }
 0x668   :  { %v1194_v60 = vsel %vm244_vm4, %v1193_v57, %v1187_v59 }
 0x669   :  { %v1196_v61 = vsel %vm1195_vm10, %v1194_v60, %v1191_v58 }
 0x66a   :  { %1198 = vst.msk [vmem:[#allocation2] sm:$0xf] %vm1197_vm11, %v1196_v61 }
 0x66b   :  { %1424 = shalt.err (!%p1421_p4)
}
 0x66c   :  { %1208 = dma.vmem_to_hbm [thread:$0]  %s1206_s22, 64, %s1671_s4, [#allocation3]  }
 0x66d   :  { %1433 = dma.done.wait [#allocation3], 64  }
 0x66e   :  { %1434 = vsyncadd [#allocation3], 4294967232 }
 0x66f   :  { %1212 = vsyncpa [#allocation3], 1 }

</bundles_post_ra>
